<compile_context>
chip_gen: v7x
topology: tpu7x:2x2x1
jax: 0.10.0
libtpu: 0.0.40
codegen_flags: <defaults>
</compile_context>

<pallas_src>
import functools

import jax
import jax.numpy as jnp
from jax.experimental import pallas as pl
from jax.experimental.pallas import tpu as pltpu


_LANES = 128
# Max rows per grid step. f32: 2048*128*4 B = 1 MiB per input per block.
_MAX_BLOCK_ROWS = 2048


def _round_up(x, m):
    return (x + m - 1) // m * m


def _sublane_multiple(dtype):
    # Sublane tiling requirement: 8 for 4-byte, 16 for 2-byte, 32 for 1-byte.
    return max(8, 32 // jnp.dtype(dtype).itemsize)


def _dice_kernel(x_ref, t_ref, o_ref, xt_acc, xx_acc, tt_acc, *,
                 smooth, block_rows, tail_rows):
    step = pl.program_id(0)
    last = pl.num_programs(0) - 1

    @pl.when(step == 0)
    def _():
        xt_acc[...] = jnp.zeros_like(xt_acc)
        xx_acc[...] = jnp.zeros_like(xx_acc)
        tt_acc[...] = jnp.zeros_like(tt_acc)

    def accumulate(masked):
        x = x_ref[...].astype(jnp.float32)
        t = t_ref[...].astype(jnp.float32)
        if masked:
            # Only the last block hangs off the end of the (rows, 128) array;
            # its out-of-range rows hold undefined data, so zero them out.
            # tail_rows is static, so this mask is a compile-time constant.
            row = jax.lax.broadcasted_iota(jnp.int32, (block_rows, _LANES), 0)
            valid = row < tail_rows
            x = jnp.where(valid, x, 0.0)
            t = jnp.where(valid, t, 0.0)

        # Fold the (block_rows, 128) products into (8, 128) accumulators with
        # pure VPU adds; the expensive cross-lane reduction happens only once,
        # on the last grid step.
        def fold(p):
            return p.reshape(block_rows // 8, 8, _LANES).sum(axis=0)

        xt_acc[...] += fold(x * t)
        xx_acc[...] += fold(x * x)
        tt_acc[...] += fold(t * t)

    if tail_rows:
        # Gate masking so every full block runs the cheap unmasked path and
        # only the single partial block pays for the selects.
        @pl.when(step != last)
        def _():
            accumulate(masked=False)

        @pl.when(step == last)
        def _():
            accumulate(masked=True)
    else:
        accumulate(masked=False)

    @pl.when(step == last)
    def _():
        intersection = jnp.sum(xt_acc[...])
        denom = (jnp.sum(xx_acc[...]) + jnp.sum(tt_acc[...])
                 + jnp.float32(smooth))
        dice = (jnp.float32(2.0) * intersection + jnp.float32(smooth)) / denom
        o_ref[0] = jnp.float32(1.0) - dice


def dice_loss(inputs, targets, smooth=1.0):
    """Pallas TPU implementation of DiceLoss.forward (batch element 0 only,
    matching the PyTorch reference)."""
    x = jnp.reshape(inputs[0], (-1,))
    t = jnp.reshape(targets[0], (-1,))
    n = x.shape[0]

    rows_exact = pl.cdiv(n, _LANES)
    sub = max(_sublane_multiple(x.dtype), _sublane_multiple(t.dtype))

    if rows_exact <= _MAX_BLOCK_ROWS:
        # Small input: a single tile-aligned block. Zero-padding is neutral
        # for all three sums and the copy is negligible at this size.
        rows = max(_round_up(rows_exact, sub), sub)
        block_rows = rows
        num_blocks = 1
        tail_rows = 0
        pad = rows * _LANES - n
        if pad:
            x = jnp.pad(x, (0, pad))
            t = jnp.pad(t, (0, pad))
    else:
        # Large input: no block-multiple padding. The contiguous reshape to
        # (-1, 128) is free when n is lane-aligned; the partial last row-block
        # is masked inside the kernel (last grid step only).
        # TODO(synk): if n % 128 != 0 we still pay one lane-alignment pad copy;
        # avoiding it would require DMA-ing the raw 1-D buffer via pl.ANY.
        if n % _LANES:
            pad = _LANES - n % _LANES
            x = jnp.pad(x, (0, pad))
            t = jnp.pad(t, (0, pad))
        rows = pl.cdiv(n, _LANES)
        block_rows = _MAX_BLOCK_ROWS
        num_blocks = pl.cdiv(rows, block_rows)
        tail_rows = rows % block_rows

    x = x.reshape(rows, _LANES)
    t = t.reshape(rows, _LANES)

    kernel = functools.partial(
        _dice_kernel,
        smooth=float(smooth),
        block_rows=block_rows,
        tail_rows=tail_rows,
    )

    out = pl.pallas_call(
        kernel,
        out_shape=jax.ShapeDtypeStruct((1,), jnp.float32),
        grid_spec=pltpu.PrefetchScalarGridSpec(
            num_scalar_prefetch=0,
            grid=(num_blocks,),
            in_specs=[
                pl.BlockSpec((block_rows, _LANES), lambda i: (i, 0)),
                pl.BlockSpec((block_rows, _LANES), lambda i: (i, 0)),
            ],
            out_specs=pl.BlockSpec(memory_space=pltpu.SMEM),
            scratch_shapes=[
                pltpu.VMEM((8, _LANES), jnp.float32),
                pltpu.VMEM((8, _LANES), jnp.float32),
                pltpu.VMEM((8, _LANES), jnp.float32),
            ],
        ),
        compiler_params=pltpu.CompilerParams(
            dimension_semantics=("arbitrary",),
            vmem_limit_bytes=32 * 1024 * 1024,
        ),
    )(x, t)
    return out[0]


def _dice_loss_ref(inputs, targets, smooth=1.0):
    x = jnp.reshape(inputs[0], (-1,)).astype(jnp.float32)
    t = jnp.reshape(targets[0], (-1,)).astype(jnp.float32)
    intersection = jnp.sum(x * t)
    dice = (2.0 * intersection + smooth) / (
        jnp.sum(x * x) + jnp.sum(t * t) + smooth)
    return 1.0 - dice


if __name__ == "__main__":
    key = jax.random.PRNGKey(0)
    k1, k2, k3, k4, k5, k6 = jax.random.split(key, 6)

    # Case 1: small NCHW, lane-aligned (single-block fast path).
    inputs = jax.nn.sigmoid(
        jax.random.normal(k1, (2, 4, 16, 16), dtype=jnp.float32))
    targets = (jax.random.uniform(k2, (2, 4, 16, 16)) > 0.5).astype(jnp.float32)
    out = dice_loss(inputs, targets, smooth=1.0)
    jax.block_until_ready(out)
    ref = _dice_loss_ref(inputs, targets, smooth=1.0)
    assert jnp.allclose(out, ref, rtol=1e-5, atol=1e-5), (out, ref)

    # Case 2: larger input exercising multiple grid steps + masked partial
    # last block (2500 rows of 128, block_rows = 2048, no wrapper padding).
    inputs2 = jax.nn.sigmoid(
        jax.random.normal(k3, (2, 8, 200, 200), dtype=jnp.float32))
    targets2 = (jax.random.uniform(k4, (2, 8, 200, 200)) > 0.5).astype(
        jnp.float32)
    out2 = dice_loss(inputs2, targets2, smooth=1.0)
    jax.block_until_ready(out2)
    ref2 = _dice_loss_ref(inputs2, targets2, smooth=1.0)
    assert jnp.allclose(out2, ref2, rtol=1e-5, atol=1e-5), (out2, ref2)

    # Case 3: tiny, lane-unaligned input (single zero-padded block).
    inputs3 = jax.nn.sigmoid(
        jax.random.normal(k5, (2, 3, 5, 7), dtype=jnp.float32))
    targets3 = (jax.random.uniform(k6, (2, 3, 5, 7)) > 0.5).astype(jnp.float32)
    out3 = dice_loss(inputs3, targets3, smooth=1.0)
    jax.block_until_ready(out3)
    ref3 = _dice_loss_ref(inputs3, targets3, smooth=1.0)
    assert jnp.allclose(out3, ref3, rtol=1e-5, atol=1e-5), (out3, ref3)

    print("KERNEL_OK")
</pallas_src>

<mosaic_0001>
module attributes {stable_mosaic.version = 11 : i64} {
  func.func @_dice_kernel(%arg0: i32, %arg1: memref<8x128xf32, #tpu.memory_space<vmem>>, %arg2: memref<8x128xf32, #tpu.memory_space<vmem>>, %arg3: memref<1xf32, #tpu.memory_space<smem>>, %arg4: memref<8x128xf32, #tpu.memory_space<vmem>>, %arg5: memref<8x128xf32, #tpu.memory_space<vmem>>, %arg6: memref<8x128xf32, #tpu.memory_space<vmem>>) attributes {dimension_semantics = [#tpu.dimension_semantics<arbitrary>], iteration_bounds = array<i64: 1>, scalar_prefetch = 0 : i64, scratch_operands = 3 : i64, tpu.core_type = #tpu.core_type<tc>, window_params = [{transform_indices = @transform_0, window_bounds = array<i64: 8, 128>}, {transform_indices = @transform_1, window_bounds = array<i64: 8, 128>}, {transform_indices = @transform_2, window_bounds = array<i64: 1>}]} {
    %c0_i32 = arith.constant 0 : i32
    %0 = arith.cmpi eq, %arg0, %c0_i32 : i32
    %1 = arith.extui %0 : i1 to i32
    %c0_i32_0 = arith.constant 0 : i32
    %2 = arith.cmpi ne, %1, %c0_i32_0 : i32
    scf.if %2 {
      %cst_20 = arith.constant 0.000000e+00 : f32
      %26 = vector.broadcast %cst_20 : f32 to vector<8x128xf32>
      %c0_21 = arith.constant 0 : index
      %c0_22 = arith.constant 0 : index
      %27 = vector.load %arg4[%c0_21, %c0_22] : memref<8x128xf32, #tpu.memory_space<vmem>>, vector<8x128xf32>
      tpu.vector_store %arg4[%c0_21, %c0_22], %26 {strides = array<i32>} : memref<8x128xf32, #tpu.memory_space<vmem>>, vector<8x128xf32>,
      %cst_23 = arith.constant 0.000000e+00 : f32
      %28 = vector.broadcast %cst_23 : f32 to vector<8x128xf32>
      %c0_24 = arith.constant 0 : index
      %c0_25 = arith.constant 0 : index
      %29 = vector.load %arg5[%c0_24, %c0_25] : memref<8x128xf32, #tpu.memory_space<vmem>>, vector<8x128xf32>
      tpu.vector_store %arg5[%c0_24, %c0_25], %28 {strides = array<i32>} : memref<8x128xf32, #tpu.memory_space<vmem>>, vector<8x128xf32>,
      %cst_26 = arith.constant 0.000000e+00 : f32
      %30 = vector.broadcast %cst_26 : f32 to vector<8x128xf32>
      %c0_27 = arith.constant 0 : index
      %c0_28 = arith.constant 0 : index
      %31 = vector.load %arg6[%c0_27, %c0_28] : memref<8x128xf32, #tpu.memory_space<vmem>>, vector<8x128xf32>
      tpu.vector_store %arg6[%c0_27, %c0_28], %30 {strides = array<i32>} : memref<8x128xf32, #tpu.memory_space<vmem>>, vector<8x128xf32>,
    } else {
    }
    %c0 = arith.constant 0 : index
    %c0_1 = arith.constant 0 : index
    %3 = vector.load %arg1[%c0, %c0_1] : memref<8x128xf32, #tpu.memory_space<vmem>>, vector<8x128xf32>
    %c0_2 = arith.constant 0 : index
    %c0_3 = arith.constant 0 : index
    %4 = vector.load %arg2[%c0_2, %c0_3] : memref<8x128xf32, #tpu.memory_space<vmem>>, vector<8x128xf32>
    %c0_4 = arith.constant 0 : index
    %c0_5 = arith.constant 0 : index
    %5 = vector.load %arg4[%c0_4, %c0_5] : memref<8x128xf32, #tpu.memory_space<vmem>>, vector<8x128xf32>
    %6 = arith.mulf %3, %4 : vector<8x128xf32>
    %7 = vector.shape_cast %6 : vector<8x128xf32> to vector<1x8x128xf32>
    %cst = arith.constant dense<0.000000e+00> : vector<8x128xf32>
    %8 = vector.multi_reduction <add>, %7, %cst [0] : vector<1x8x128xf32> to vector<8x128xf32>
    %9 = arith.addf %5, %8 : vector<8x128xf32>
    %c0_6 = arith.constant 0 : index
    %c0_7 = arith.constant 0 : index
    %10 = vector.load %arg4[%c0_6, %c0_7] : memref<8x128xf32, #tpu.memory_space<vmem>>, vector<8x128xf32>
    tpu.vector_store %arg4[%c0_6, %c0_7], %9 {strides = array<i32>} : memref<8x128xf32, #tpu.memory_space<vmem>>, vector<8x128xf32>,
    %c0_8 = arith.constant 0 : index
    %c0_9 = arith.constant 0 : index
    %11 = vector.load %arg5[%c0_8, %c0_9] : memref<8x128xf32, #tpu.memory_space<vmem>>, vector<8x128xf32>
    %12 = arith.mulf %3, %3 : vector<8x128xf32>
    %13 = vector.shape_cast %12 : vector<8x128xf32> to vector<1x8x128xf32>
    %cst_10 = arith.constant dense<0.000000e+00> : vector<8x128xf32>
    %14 = vector.multi_reduction <add>, %13, %cst_10 [0] : vector<1x8x128xf32> to vector<8x128xf32>
    %15 = arith.addf %11, %14 : vector<8x128xf32>
    %c0_11 = arith.constant 0 : index
    %c0_12 = arith.constant 0 : index
    %16 = vector.load %arg5[%c0_11, %c0_12] : memref<8x128xf32, #tpu.memory_space<vmem>>, vector<8x128xf32>
    tpu.vector_store %arg5[%c0_11, %c0_12], %15 {strides = array<i32>} : memref<8x128xf32, #tpu.memory_space<vmem>>, vector<8x128xf32>,
    %c0_13 = arith.constant 0 : index
    %c0_14 = arith.constant 0 : index
    %17 = vector.load %arg6[%c0_13, %c0_14] : memref<8x128xf32, #tpu.memory_space<vmem>>, vector<8x128xf32>
    %18 = arith.mulf %4, %4 : vector<8x128xf32>
    %19 = vector.shape_cast %18 : vector<8x128xf32> to vector<1x8x128xf32>
    %cst_15 = arith.constant dense<0.000000e+00> : vector<8x128xf32>
    %20 = vector.multi_reduction <add>, %19, %cst_15 [0] : vector<1x8x128xf32> to vector<8x128xf32>
    %21 = arith.addf %17, %20 : vector<8x128xf32>
    %c0_16 = arith.constant 0 : index
    %c0_17 = arith.constant 0 : index
    %22 = vector.load %arg6[%c0_16, %c0_17] : memref<8x128xf32, #tpu.memory_space<vmem>>, vector<8x128xf32>
    tpu.vector_store %arg6[%c0_16, %c0_17], %21 {strides = array<i32>} : memref<8x128xf32, #tpu.memory_space<vmem>>, vector<8x128xf32>,
    %c0_i32_18 = arith.constant 0 : i32
    %23 = arith.cmpi eq, %arg0, %c0_i32_18 : i32
    %24 = arith.extui %23 : i1 to i32
    %c0_i32_19 = arith.constant 0 : i32
    %25 = arith.cmpi ne, %24, %c0_i32_19 : i32
    scf.if %25 {
      %c0_20 = arith.constant 0 : index
      %c0_21 = arith.constant 0 : index
      %26 = vector.load %arg4[%c0_20, %c0_21] : memref<8x128xf32, #tpu.memory_space<vmem>>, vector<8x128xf32>
      %27 = vector.shape_cast %26 : vector<8x128xf32> to vector<1x8x128xf32>
      %cst_22 = arith.constant dense<0.000000e+00> : vector<1xf32>
      %28 = vector.multi_reduction <add>, %27, %cst_22 [1, 2] : vector<1x8x128xf32> to vector<1xf32>
      %29 = vector.shape_cast %28 : vector<1xf32> to vector<1x1x1xf32>
      %30 = vector.extract %29[0, 0, 0] : f32 from vector<1x1x1xf32>
      %c0_23 = arith.constant 0 : index
      %c0_24 = arith.constant 0 : index
      %31 = vector.load %arg5[%c0_23, %c0_24] : memref<8x128xf32, #tpu.memory_space<vmem>>, vector<8x128xf32>
      %32 = vector.shape_cast %31 : vector<8x128xf32> to vector<1x8x128xf32>
      %cst_25 = arith.constant dense<0.000000e+00> : vector<1xf32>
      %33 = vector.multi_reduction <add>, %32, %cst_25 [1, 2] : vector<1x8x128xf32> to vector<1xf32>
      %34 = vector.shape_cast %33 : vector<1xf32> to vector<1x1x1xf32>
      %35 = vector.extract %34[0, 0, 0] : f32 from vector<1x1x1xf32>
      %c0_26 = arith.constant 0 : index
      %c0_27 = arith.constant 0 : index
      %36 = vector.load %arg6[%c0_26, %c0_27] : memref<8x128xf32, #tpu.memory_space<vmem>>, vector<8x128xf32>
      %37 = vector.shape_cast %36 : vector<8x128xf32> to vector<1x8x128xf32>
      %cst_28 = arith.constant dense<0.000000e+00> : vector<1xf32>
      %38 = vector.multi_reduction <add>, %37, %cst_28 [1, 2] : vector<1x8x128xf32> to vector<1xf32>
      %39 = vector.shape_cast %38 : vector<1xf32> to vector<1x1x1xf32>
      %40 = vector.extract %39[0, 0, 0] : f32 from vector<1x1x1xf32>
      %41 = arith.addf %35, %40 : f32
      %cst_29 = arith.constant 1.000000e+00 : f32
      %42 = arith.addf %41, %cst_29 : f32
      %cst_30 = arith.constant 2.000000e+00 : f32
      %43 = arith.mulf %cst_30, %30 : f32
      %cst_31 = arith.constant 1.000000e+00 : f32
      %44 = arith.addf %43, %cst_31 : f32
      %45 = arith.divf %44, %42 : f32
      %cst_32 = arith.constant 1.000000e+00 : f32
      %46 = arith.subf %cst_32, %45 : f32
      %c0_33 = arith.constant 0 : index
      %47 = memref.load %arg3[%c0_33] : memref<1xf32, #tpu.memory_space<smem>>
      memref.store %46, %arg3[%c0_33] : memref<1xf32, #tpu.memory_space<smem>>
    } else {
    }
    return
  }
  func.func @transform_0(%arg0: i32) -> (i32, i32) {
    %c0_i32 = arith.constant 0 : i32
    %c0_i32_0 = arith.constant 0 : i32
    return %arg0, %c0_i32 : i32, i32
  }
  func.func @transform_1(%arg0: i32) -> (i32, i32) {
    %c0_i32 = arith.constant 0 : i32
    %c0_i32_0 = arith.constant 0 : i32
    return %arg0, %c0_i32 : i32, i32
  }
  func.func @transform_2(%arg0: i32) -> i32 {
    %c0_i32 = arith.constant 0 : i32
    %c0_i32_0 = arith.constant 0 : i32
    return %c0_i32 : i32
  }
}

</mosaic_0001>

<bundles_post_ra>
// kernel: tpu_custom_call.1
= control target key start
LH: loop header
LB: loop body
LE: loop exit
PB: predicated region body
PF: predicated region fallthrough
CT: control target
= control target key end

     0   :  { %7 = vsyncpa [#allocation6], 0  ;;  %s246_s0 = inlined_call_operand.hbm [shape: f32[8,128], index: 0, kind: input, shape index: {}]   ;;  %s247_s1 = inlined_call_operand.hbm [shape: f32[8,128], index: 1, kind: input, shape index: {}]   ;;  %s248_s2 = inlined_call_operand.hbm [shape: f32[1], index: 2, kind: output, shape index: {}]  }
   0x1   :  { %8 = vsyncpa [#allocation9], 0 }
   0x2   :  { %9 = vsyncpa [#allocation7], 0  ;;  %s192_s9 = smov [#allocation5]   ;;  %s193_s11 = smov [#allocation8]  }
   0x3   :  { %s16_s10 = sshll.u32 %s192_s9, 4  ;;  %s26_s12 = sshll.u32 %s193_s11, 4  ;;  %s17_s10 = int_to_ptr.vmem [resolvable:$true] %s16_s10  ;;  %s27_s12 = int_to_ptr.vmem [resolvable:$true] %s26_s12 }
   0x4   :  { %s132_s15 = scalar_lea.hbm %s246_s0, 128 }
   0x5   :  { %p133_p0 = scmp.ne.s32.totalorder %s246_s0, %s132_s15  ;;  %p136_p1 = scmp.lt.u32.totalorder %s132_s15, %s246_s0 }
   0x7   :  { %p138_p2 = pnand %p136_p1, %p133_p0 }
   0x9   :  { %141 = shalt.err (!%p138_p2)
}
   0xa   :  { %s142_s20 = scalar_lea.vmem %s17_s10, 128  ;;  %p147_p4 = scmp.lt.s32.totalorder %s17_s10, %s17_s10 }
   0xb   :  { %p143_p3 = scmp.ne.s32.totalorder %s17_s10, %s142_s20  ;;  %p148_p5 = scmp.lt.s32.totalorder %s142_s20, %s142_s20 }
   0xd   :  { %p149_p6 = por %p148_p5, %p147_p4 }
   0xf   :  { %p150_p7 = pnand %p149_p6, %p143_p3 }
  0x11   :  { %153 = shalt.err (!%p150_p7)
}
  0x12   :  { %19 = dma.hbm_to_vmem [thread:$0]  %s246_s0, 128, %s17_s10, [#allocation6]  }
  0x13   :  { %s154_s25 = scalar_lea.hbm %s247_s1, 128 }
  0x14   :  { %p155_p8 = scmp.ne.s32.totalorder %s247_s1, %s154_s25  ;;  %p158_p9 = scmp.lt.u32.totalorder %s154_s25, %s247_s1 }
  0x16   :  { %p160_p10 = pnand %p158_p9, %p155_p8 }
  0x18   :  { %163 = shalt.err (!%p160_p10)
}
  0x19   :  { %s164_s30 = scalar_lea.vmem %s27_s12, 128  ;;  %p169_p12 = scmp.lt.s32.totalorder %s27_s12, %s27_s12 }
  0x1a   :  { %p165_p11 = scmp.ne.s32.totalorder %s27_s12, %s164_s30  ;;  %p170_p13 = scmp.lt.s32.totalorder %s164_s30, %s164_s30 }
  0x1c   :  { %p171_p0 = por %p170_p13, %p169_p12 }
  0x1e   :  { %p172_p1 = pnand %p171_p0, %p165_p11 }
  0x20   :  { %175 = shalt.err (!%p172_p1)
}
  0x21   :  { %29 = dma.hbm_to_vmem [thread:$0]  %s247_s1, 128, %s27_s12, [#allocation9]  }
  0x22   :  { %186 = dma.done.wait [#allocation6], 128  }
  0x23   :  { %187 = vsyncadd [#allocation6], 4294967168 }
  0x24   :  { %188 = dma.done.wait [#allocation9], 128  }
  0x25   :  { %189 = vsyncadd [#allocation9], 4294967168  ;;  %v44_v0 = vld [vmem:[#allocation8] sm:$0xff]  ;;  %v43_v1 = vld [vmem:[#allocation5] sm:$0xff]  ;;  %s176_s15 = scalar_lea.hbm %s248_s2, 16 }
  0x26   :  { %v56_v2 = vmul.f32 %v44_v0, %v44_v0  ;;  %v46_v3 = vmul.f32 %v44_v0, %v43_v1  ;;  %v51_v4 = vmul.f32 %v43_v1, %v43_v1  ;;  %p177_p2 = scmp.ne.s32.totalorder %s248_s2, %s176_s15  ;;  %p180_p3 = scmp.lt.u32.totalorder %s176_s15, %s248_s2 }
  0x28   :  { %84 = vadd.xlane.f32.xlu1 %v56_v2  ;;  %64 = vadd.xlane.f32.xlu0 %v46_v3  ;;  %p182_p4 = pnand %p180_p3, %p177_p2 }
  0x2c   :  { %74 = vadd.xlane.f32.xlu0 %v51_v4 }
  0xb5   :  { %v85_v5 = vpop.xlane.xlu1 %84  ;;  %v65_v6 = vpop.xlane.xlu0 %64 }
  0xb6   :  { %v86_v7 = vrot.slane %v85_v5, 4  ;;  %v66_v8 = vrot.slane %v65_v6, 4 }
  0xb8   :  { %v87_v9 = vadd.f32 %v86_v7, %v85_v5  ;;  %v67_v10 = vadd.f32 %v66_v8, %v65_v6 }
  0xb9   :  { %v75_v11 = vpop.xlane.xlu0 %74 }
  0xba   :  { %v88_v12 = vrot.slane %v87_v9, 2  ;;  %v68_v13 = vrot.slane %v67_v10, 2  ;;  %v76_v14 = vrot.slane %v75_v11, 4 }
  0xbc   :  { %v77_v15 = vadd.f32 %v76_v14, %v75_v11  ;;  %v69_v16 = vadd.f32 %v68_v13, %v67_v10  ;;  %v89_v17 = vadd.f32 %v88_v12, %v87_v9 }
  0xbe   :  { %v78_v18 = vrot.slane %v77_v15, 2  ;;  %v70_v19 = vrot.slane %v69_v16, 1  ;;  %v90_v22 = vrot.slane %v89_v17, 1 }
  0xc0   :  { %v79_v20 = vadd.f32 %v78_v18, %v77_v15  ;;  %v71_v21 = vadd.f32 %v70_v19, %v69_v16  ;;  %v91_v25 = vadd.f32 %v90_v22, %v89_v17 }
  0xc2   :  { %119 = vpush %v71_v21  ;;  %v80_v23 = vrot.slane %v79_v20, 1 }
  0xc4   :  { %v81_v24 = vadd.f32 %v80_v23, %v79_v20 }
  0xc6   :  { %121 = vpush %v81_v24 }
  0xc7   :  { %123 = vpush %v91_v25 }
  0xf3   :  { %s120_s1 = spop %119 }
  0xf4   :  { %s95_s8 = smul.f32 2.0, %s120_s1 }
  0xf6   :  { %s96_s9 = sadd.f32 1.0, %s95_s8 }
  0xf7   :  { %s122_s4 = spop %121 }
  0xf8   :  { %s124_s5 = spop %123 }
  0xf9   :  { %s93_s6 = sadd.f32 %s124_s5, %s122_s4 }
  0xfb   :  { %s94_s7 = sadd.f32 1.0, %s93_s6 }
  0xfd   :  { %v97_v26 = vstv %s94_s7 }
  0xfe   :  { %130 = vrcp.f32 %v97_v26 }
 0x108   :  { %v131_v27 = vpop.eup %130 }
 0x109   :  { %125 = vpush %v131_v27 }
 0x13a   :  { %s126_s10 = spop %125 }
 0x13b   :  { %s100_s11 = smul.f32 %s126_s10, %s96_s9 }
 0x13d   :  { %s101_s12 = ssub.f32 1.0, %s100_s11 }
 0x13f   :  { %103 = sst [smem:[#allocation10]] %s101_s12 }
 0x140   :  { %185 = shalt.err (!%p182_p4)
}
 0x141   :  { %s194_s20 = smov [#allocation10]  }
 0x142   :  { %111 = dma.smem_to_hbm %s194_s20, 16, %s248_s2, [#allocation7]  }
 0x143   :  { %190 = dma.done.wait [#allocation7], 16  }
 0x144   :  { %191 = vsyncadd [#allocation7], 4294967280 }
 0x145   :  { %115 = sfence }
 0x146   :  { %116 = vsyncpa [#allocation6], 1 }
 0x147   :  { %117 = vsyncpa [#allocation9], 1 }
 0x148   :  { %118 = vsyncpa [#allocation7], 1 }

</bundles_post_ra>
